<compile_context>
chip_gen: v5e
topology: v5e:2x2
jax: 0.10.0
libtpu: 0.0.40
codegen_flags: <defaults>
</compile_context>

<pallas_src>
import functools

import jax
import jax.numpy as jnp
from jax.experimental import pallas as pl
from jax.experimental.pallas import tpu as pltpu


def _conv_kernel_im2col(x_ref, halo_ref, w_ref, b_ref, o_ref, scr_ref, *,
                        cast_dtype):
    # x_ref    : (BB, TN, C)   activation tile (channels-last)
    # halo_ref : (BB, 1, 2, C) circular wrap rows [prev, next] for this tile
    # w_ref    : (3C, C)       tap-stacked weights, w[k*C + ci, co] = weight[co, ci, k]
    # b_ref    : (1, C)        bias (f32)
    # o_ref    : (BB, TN, C)   output tile
    # scr_ref  : (TN, 3C)      im2col scratch (x dtype)
    bb, tn, c = x_ref.shape
    w = w_ref[...]                      # resident across the grid
    bias = b_ref[...]                   # (1, C) f32

    for bi in range(bb):                # static unroll over the batch block
        xt = x_ref[bi]                  # (TN, C)
        halo = halo_ref[bi, 0]          # (2, C): row 0 = prev, row 1 = next

        # tap 1: offset 0 (aligned copy into the middle lanes)
        scr_ref[:, c:2 * c] = xt
        # tap 0: x[i-1]  -> roll down by 1 (XLU); wrap row fixed from halo.
        scr_ref[:, 0:c] = pltpu.roll(xt, 1, axis=0)
        # tap 2: x[i+1]  -> roll by tn-1 (pltpu.roll needs non-negative shift).
        scr_ref[:, 2 * c:3 * c] = pltpu.roll(xt, tn - 1, axis=0)
        # Single-row halo fix-ups (static indices -> masked stores, no selects).
        scr_ref[0:1, 0:c] = halo[0:1, :]
        scr_ref[tn - 1:tn, 2 * c:3 * c] = halo[1:2, :]

        taps = scr_ref[...]             # (TN, 3C)
        if cast_dtype is not None:
            taps = taps.astype(cast_dtype)   # in-kernel cast, hidden under DMA
        # One K=3C MXU matmul (3x contraction depth vs three K=C passes).
        acc = jnp.dot(taps, w, preferred_element_type=jnp.float32)
        acc = acc + bias
        o_ref[bi] = acc.astype(o_ref.dtype)


def _conv_kernel_three_dot(x_ref, halo_ref, w_ref, b_ref, o_ref, *, cast_dtype):
    # Fallback for C % 128 != 0: a lane-axis concat would force relayout
    # copies, so accumulate three K=C dots instead.
    # w_ref : (3, C, C) with w_ref[k, ci, co] = weight[co, ci, k]
    bb, tn, c = x_ref.shape
    bias = b_ref[...]
    row = jax.lax.broadcasted_iota(jnp.int32, (tn, 1), 0)
    w0, w1, w2 = w_ref[0], w_ref[1], w_ref[2]
    for bi in range(bb):
        xt = x_ref[bi]
        halo = halo_ref[bi, 0]
        prev_row = halo[0:1, :]
        next_row = halo[1:2, :]
        x0 = jnp.where(row == 0, prev_row, pltpu.roll(xt, 1, axis=0))
        x2 = jnp.where(row == tn - 1, next_row, pltpu.roll(xt, tn - 1, axis=0))
        if cast_dtype is not None:
            xt = xt.astype(cast_dtype)
            x0 = x0.astype(cast_dtype)
            x2 = x2.astype(cast_dtype)
        acc = jnp.dot(x0, w0, preferred_element_type=jnp.float32)
        acc = acc + jnp.dot(xt, w1, preferred_element_type=jnp.float32)
        acc = acc + jnp.dot(x2, w2, preferred_element_type=jnp.float32)
        acc = acc + bias
        o_ref[bi] = acc.astype(o_ref.dtype)


def _pick_block_n(n, n_batch, target=1024):
    """Largest multiple of 8 dividing n that is <= target, else n (full axis)."""
    tgt = int(target)
    if n_batch == 1:
        # Keep >= 2 sequence tiles when B == 1 so the grid has >= 2 steps
        # (v7x has 2 TensorCores; the pipeline needs >1 step to overlap).
        tgt = min(tgt, max(8, n // 2))
    if n <= tgt:
        return n
    start = min(tgt, n)
    start -= start % 8
    for tn in range(start, 7, -8):
        if n % tn == 0:
            return tn
    # TODO(synk): pad + mask a non-dividing sequence length instead of a single
    # oversized full-length tile (could exceed VMEM on v7x for huge, awkward N).
    return n


def _pick_block_b(n_batch, nt, tn, c, itemsize, target_bytes=1 << 20, max_bb=8):
    """Grow the batch block until the tile reaches ~1 MiB (grid keeps >=2 steps)."""
    best = 1
    total_steps = n_batch * nt
    for d in range(1, min(n_batch, max_bb) + 1):
        if n_batch % d:
            continue
        if d * tn * c * itemsize > target_bytes:
            break
        if (n_batch // d) * nt < min(2, total_steps):
            continue
        best = d
    return best


def conv_module_forward(x, weight, bias, *, block_n=None, block_b=None,
                        compute_dtype=None):
    """Forward pass of the PyTorch `Conv` module (inference semantics).

    x       : (B, N, C)  channels-last activations.
    weight  : (C, C, 3)  nn.Conv1d(dim, dim, 3) weight in (C_out, C_in, K) layout.
    bias    : (C,)       nn.Conv1d bias.
    block_n : sequence tile size (multiple of 8 dividing N, or == N).
    block_b : batch tile size (divides B).
    compute_dtype: optional lower-precision matmul dtype (e.g. jnp.bfloat16).
        Taps are cast in-kernel just before the dot; accumulation stays f32 and
        the output keeps x.dtype. Recommended on v5e (bf16-native MXU).
    """
    B, N, C = x.shape
    assert weight.shape == (C, C, 3), weight.shape
    assert bias.shape == (C,), bias.shape

    itemsize = jnp.dtype(x.dtype).itemsize

    tn = _pick_block_n(N, B) if block_n is None else int(block_n)
    assert N % tn == 0 and (tn % 8 == 0 or tn == N), (N, tn)
    nt = N // tn

    bb = (_pick_block_b(B, nt, tn, C, itemsize)
          if block_b is None else int(block_b))
    assert B % bb == 0, (B, bb)

    # One merged circular halo input: halo[b, t, 0] = x[b, t*tn - 1],
    # halo[b, t, 1] = x[b, t*tn + tn] (both modulo N). Tiny gathers instead of
    # materialising a padded (B, N+2, C) copy in HBM.
    starts = jnp.arange(nt) * tn
    prev = x[:, (starts - 1) % N, :]          # (B, nt, C)
    nxt = x[:, (starts + tn) % N, :]          # (B, nt, C)
    halo = jnp.stack([prev, nxt], axis=2)     # (B, nt, 2, C)

    b_row = bias.reshape(1, C).astype(jnp.float32)

    use_im2col = (C % 128 == 0)
    if use_im2col:
        # w_cat[k*C + ci, co] = weight[co, ci, k]
        w_in = jnp.transpose(weight, (2, 1, 0)).reshape(3 * C, C)
        w_spec = pl.BlockSpec((3 * C, C), lambda b, t: (0, 0))
        kernel = functools.partial(_conv_kernel_im2col, cast_dtype=compute_dtype)
        scratch_shapes = [pltpu.VMEM((tn, 3 * C), x.dtype)]
    else:
        w_in = jnp.transpose(weight, (2, 1, 0))              # (3, C, C)
        w_spec = pl.BlockSpec((3, C, C), lambda b, t: (0, 0, 0))
        kernel = functools.partial(_conv_kernel_three_dot,
                                   cast_dtype=compute_dtype)
        scratch_shapes = []

    if compute_dtype is not None:
        # Only the tiny weights/halo are pre-cast in the wrapper; activations
        # are cast in-kernel (avoids an extra full HBM pass on a mem-bound op).
        w_in = w_in.astype(compute_dtype)
        halo = halo.astype(compute_dtype) if not use_im2col else halo

    # VMEM budget estimate (double-buffered in/out + scratch + weights + halos).
    tile_bytes = bb * tn * C * itemsize
    w_bytes = int(w_in.size) * jnp.dtype(w_in.dtype).itemsize
    scr_bytes = tn * 3 * C * itemsize if use_im2col else 0
    est = 4 * tile_bytes + scr_bytes + w_bytes + 4 * bb * 2 * C * itemsize + (1 << 20)
    vmem_limit = int(min(max(4 * est, 16 << 20), 64 << 20))

    cost = pl.CostEstimate(
        flops=2 * B * N * (3 * C) * C,
        transcendentals=0,
        bytes_accessed=2 * B * N * C * itemsize + w_bytes + B * nt * 2 * C * itemsize,
    )

    out = pl.pallas_call(
        kernel,
        out_shape=jax.ShapeDtypeStruct((B, N, C), x.dtype),
        grid=(B // bb, nt),
        in_specs=[
            pl.BlockSpec((bb, tn, C), lambda b, t: (b, t, 0)),       # activations
            pl.BlockSpec((bb, 1, 2, C), lambda b, t: (b, t, 0, 0)),  # merged halo
            w_spec,                                                   # resident weights
            pl.BlockSpec((1, C), lambda b, t: (0, 0)),                # resident bias
        ],
        out_specs=pl.BlockSpec((bb, tn, C), lambda b, t: (b, t, 0)),
        scratch_shapes=scratch_shapes,
        compiler_params=pltpu.CompilerParams(
            dimension_semantics=("parallel", "parallel"),
            vmem_limit_bytes=vmem_limit),
        cost_estimate=cost,
    )(x, halo, w_in, b_row)
    # TODO(synk): training-mode Dropout (p > 0) is not implemented; eval-mode /
    # p=0.0 dropout is the identity, matching the module's inference semantics.
    return out


def _reference_forward(x, weight, bias):
    """Pure-JAX reference matching the PyTorch module exactly."""
    N = x.shape[1]
    x_pad = jnp.concatenate([x[:, -1:, :], x, x[:, :1, :]], axis=1)  # (B, N+2, Ci)
    taps = jnp.stack([x_pad[:, k:k + N, :] for k in range(3)], axis=-1)  # (B,N,Ci,3)
    return jnp.einsum('bnik,oik->bno', taps, weight) + bias[None, None, :]


if __name__ == "__main__":
    key = jax.random.PRNGKey(0)
    B, N, dim = 2, 32, 128

    k_x, k_w, k_b = jax.random.split(key, 3)
    x = jax.random.normal(k_x, (B, N, dim), dtype=jnp.float32)
    weight = jax.random.normal(k_w, (dim, dim, 3), dtype=jnp.float32) * 0.1
    bias = jax.random.normal(k_b, (dim,), dtype=jnp.float32) * 0.1

    ref = _reference_forward(x, weight, bias)

    # Tiled path: 4 sequence tiles of 8 rows (batch auto-blocked to 2)
    # -> exercises the circular halo fix-ups and the batch loop.
    out_tiled = jax.block_until_ready(
        conv_module_forward(x, weight, bias, block_n=8))
    assert out_tiled.shape == (B, N, dim)
    assert jnp.allclose(out_tiled, ref, atol=1e-3, rtol=1e-3), \
        "tiled kernel mismatch vs reference"

    # Default tile choice (single full-sequence tile per batch element here).
    out_full = jax.block_until_ready(conv_module_forward(x, weight, bias))
    assert jnp.allclose(out_full, ref, atol=1e-3, rtol=1e-3), \
        "full-tile kernel mismatch vs reference"

    # bf16 compute path (in-kernel cast, f32 accumulation) with looser tolerance.
    out_bf16 = jax.block_until_ready(
        conv_module_forward(x, weight, bias, block_n=16,
                            compute_dtype=jnp.bfloat16))
    assert jnp.allclose(out_bf16, ref, atol=0.2, rtol=0.1), \
        "bf16 kernel mismatch vs reference"

    print("KERNEL_OK")
</pallas_src>

<mosaic_0001>
module attributes {stable_mosaic.version = 11 : i64} {
  func.func @_conv_kernel_im2col(%arg0: i32, %arg1: i32, %arg2: memref<2x8x128xf32, #tpu.memory_space<vmem>>, %arg3: memref<2x1x2x128xf32, #tpu.memory_space<vmem>>, %arg4: memref<384x128xf32, #tpu.memory_space<vmem>>, %arg5: memref<1x128xf32, #tpu.memory_space<vmem>>, %arg6: memref<2x8x128xf32, #tpu.memory_space<vmem>>, %arg7: memref<8x384xf32, #tpu.memory_space<vmem>>) attributes {dimension_semantics = [#tpu.dimension_semantics<parallel>, #tpu.dimension_semantics<parallel>], iteration_bounds = array<i64: 1, 4>, scalar_prefetch = 0 : i64, scratch_operands = 1 : i64, tpu.core_type = #tpu.core_type<tc>, window_params = [{transform_indices = @transform_0, window_bounds = array<i64: 2, 8, 128>}, {transform_indices = @transform_1, window_bounds = array<i64: 2, 1, 2, 128>}, {pipeline_mode = #tpu.pipeline_mode<synchronous>, transform_indices = @transform_2, window_bounds = array<i64: 384, 128>}, {pipeline_mode = #tpu.pipeline_mode<synchronous>, transform_indices = @transform_3, window_bounds = array<i64: 1, 128>}, {transform_indices = @transform_4, window_bounds = array<i64: 2, 8, 128>}]} {
    %c0 = arith.constant 0 : index
    %c0_0 = arith.constant 0 : index
    %0 = vector.load %arg4[%c0, %c0_0] : memref<384x128xf32, #tpu.memory_space<vmem>>, vector<384x128xf32>
    %c0_1 = arith.constant 0 : index
    %c0_2 = arith.constant 0 : index
    %1 = vector.load %arg5[%c0_1, %c0_2] : memref<1x128xf32, #tpu.memory_space<vmem>>, vector<1x128xf32>
    %c0_3 = arith.constant 0 : index
    %c0_4 = arith.constant 0 : index
    %c0_5 = arith.constant 0 : index
    %2 = vector.load %arg2[%c0_3, %c0_4, %c0_5] : memref<2x8x128xf32, #tpu.memory_space<vmem>>, vector<1x8x128xf32>
    %3 = vector.shape_cast %2 : vector<1x8x128xf32> to vector<8x128xf32>
    %c0_6 = arith.constant 0 : index
    %c0_7 = arith.constant 0 : index
    %c0_8 = arith.constant 0 : index
    %c0_9 = arith.constant 0 : index
    %4 = vector.load %arg3[%c0_6, %c0_7, %c0_8, %c0_9] : memref<2x1x2x128xf32, #tpu.memory_space<vmem>>, vector<1x1x2x128xf32>
    %5 = vector.shape_cast %4 : vector<1x1x2x128xf32> to vector<2x128xf32>
    %c0_10 = arith.constant 0 : index
    %c128 = arith.constant 128 : index
    %6 = vector.load %arg7[%c0_10, %c128] : memref<8x384xf32, #tpu.memory_space<vmem>>, vector<8x128xf32>
    tpu.vector_store %arg7[%c0_10, %c128], %3 {strides = array<i32>} : memref<8x384xf32, #tpu.memory_space<vmem>>, vector<8x128xf32>,
    %c1_i32 = arith.constant 1 : i32
    %7 = tpu.dynamic_rotate %3 by %c1_i32 dim 0 : vector<8x128xf32>, i32 -> vector<8x128xf32>
    %c0_11 = arith.constant 0 : index
    %c0_12 = arith.constant 0 : index
    %8 = vector.load %arg7[%c0_11, %c0_12] : memref<8x384xf32, #tpu.memory_space<vmem>>, vector<8x128xf32>
    tpu.vector_store %arg7[%c0_11, %c0_12], %7 {strides = array<i32>} : memref<8x384xf32, #tpu.memory_space<vmem>>, vector<8x128xf32>,
    %c7_i32 = arith.constant 7 : i32
    %9 = tpu.dynamic_rotate %3 by %c7_i32 dim 0 : vector<8x128xf32>, i32 -> vector<8x128xf32>
    %c0_13 = arith.constant 0 : index
    %c256 = arith.constant 256 : index
    %10 = vector.load %arg7[%c0_13, %c256] : memref<8x384xf32, #tpu.memory_space<vmem>>, vector<8x128xf32>
    tpu.vector_store %arg7[%c0_13, %c256], %9 {strides = array<i32>} : memref<8x384xf32, #tpu.memory_space<vmem>>, vector<8x128xf32>,
    %11 = vector.extract_strided_slice %5 {offsets = [0, 0], sizes = [1, 128], strides = [1, 1]} : vector<2x128xf32> to vector<1x128xf32>
    %c0_14 = arith.constant 0 : index
    %c0_15 = arith.constant 0 : index
    %12 = vector.load %arg7[%c0_14, %c0_15] : memref<8x384xf32, #tpu.memory_space<vmem>>, vector<1x128xf32>
    tpu.vector_store %arg7[%c0_14, %c0_15], %11 {strides = array<i32>} : memref<8x384xf32, #tpu.memory_space<vmem>>, vector<1x128xf32>,
    %13 = vector.extract_strided_slice %5 {offsets = [1, 0], sizes = [1, 128], strides = [1, 1]} : vector<2x128xf32> to vector<1x128xf32>
    %c7 = arith.constant 7 : index
    %c256_16 = arith.constant 256 : index
    %14 = vector.load %arg7[%c7, %c256_16] : memref<8x384xf32, #tpu.memory_space<vmem>>, vector<1x128xf32>
    tpu.vector_store %arg7[%c7, %c256_16], %13 {strides = array<i32>} : memref<8x384xf32, #tpu.memory_space<vmem>>, vector<1x128xf32>,
    %c0_17 = arith.constant 0 : index
    %c0_18 = arith.constant 0 : index
    %15 = vector.load %arg7[%c0_17, %c0_18] : memref<8x384xf32, #tpu.memory_space<vmem>>, vector<8x384xf32>
    %cst = arith.constant dense<0.000000e+00> : vector<8x128xf32>
    %16 = tpu.matmul %15, %0, %cst {dimension_numbers = #tpu.dot_dimension_numbers<[1], [0], [0], [1], [0, 0, 1, 1], [], []>} : vector<8x384xf32>, vector<384x128xf32>, vector<8x128xf32> -> vector<8x128xf32>
    %17 = vector.broadcast %1 : vector<1x128xf32> to vector<8x128xf32>
    %18 = arith.addf %16, %17 : vector<8x128xf32>
    %c0_19 = arith.constant 0 : index
    %c0_20 = arith.constant 0 : index
    %c0_21 = arith.constant 0 : index
    %19 = vector.load %arg6[%c0_19, %c0_20, %c0_21] : memref<2x8x128xf32, #tpu.memory_space<vmem>>, vector<1x8x128xf32>
    %20 = vector.shape_cast %19 : vector<1x8x128xf32> to vector<8x128xf32>
    %21 = vector.shape_cast %18 : vector<8x128xf32> to vector<1x8x128xf32>
    tpu.vector_store %arg6[%c0_19, %c0_20, %c0_21], %21 {strides = array<i32>} : memref<2x8x128xf32, #tpu.memory_space<vmem>>, vector<1x8x128xf32>,
    %c1 = arith.constant 1 : index
    %c0_22 = arith.constant 0 : index
    %c0_23 = arith.constant 0 : index
    %22 = vector.load %arg2[%c1, %c0_22, %c0_23] : memref<2x8x128xf32, #tpu.memory_space<vmem>>, vector<1x8x128xf32>
    %23 = vector.shape_cast %22 : vector<1x8x128xf32> to vector<8x128xf32>
    %c1_24 = arith.constant 1 : index
    %c0_25 = arith.constant 0 : index
    %c0_26 = arith.constant 0 : index
    %c0_27 = arith.constant 0 : index
    %24 = vector.load %arg3[%c1_24, %c0_25, %c0_26, %c0_27] : memref<2x1x2x128xf32, #tpu.memory_space<vmem>>, vector<1x1x2x128xf32>
    %25 = vector.shape_cast %24 : vector<1x1x2x128xf32> to vector<2x128xf32>
    %c0_28 = arith.constant 0 : index
    %c128_29 = arith.constant 128 : index
    %26 = vector.load %arg7[%c0_28, %c128_29] : memref<8x384xf32, #tpu.memory_space<vmem>>, vector<8x128xf32>
    tpu.vector_store %arg7[%c0_28, %c128_29], %23 {strides = array<i32>} : memref<8x384xf32, #tpu.memory_space<vmem>>, vector<8x128xf32>,
    %c1_i32_30 = arith.constant 1 : i32
    %27 = tpu.dynamic_rotate %23 by %c1_i32_30 dim 0 : vector<8x128xf32>, i32 -> vector<8x128xf32>
    %c0_31 = arith.constant 0 : index
    %c0_32 = arith.constant 0 : index
    %28 = vector.load %arg7[%c0_31, %c0_32] : memref<8x384xf32, #tpu.memory_space<vmem>>, vector<8x128xf32>
    tpu.vector_store %arg7[%c0_31, %c0_32], %27 {strides = array<i32>} : memref<8x384xf32, #tpu.memory_space<vmem>>, vector<8x128xf32>,
    %c7_i32_33 = arith.constant 7 : i32
    %29 = tpu.dynamic_rotate %23 by %c7_i32_33 dim 0 : vector<8x128xf32>, i32 -> vector<8x128xf32>
    %c0_34 = arith.constant 0 : index
    %c256_35 = arith.constant 256 : index
    %30 = vector.load %arg7[%c0_34, %c256_35] : memref<8x384xf32, #tpu.memory_space<vmem>>, vector<8x128xf32>
    tpu.vector_store %arg7[%c0_34, %c256_35], %29 {strides = array<i32>} : memref<8x384xf32, #tpu.memory_space<vmem>>, vector<8x128xf32>,
    %31 = vector.extract_strided_slice %25 {offsets = [0, 0], sizes = [1, 128], strides = [1, 1]} : vector<2x128xf32> to vector<1x128xf32>
    %c0_36 = arith.constant 0 : index
    %c0_37 = arith.constant 0 : index
    %32 = vector.load %arg7[%c0_36, %c0_37] : memref<8x384xf32, #tpu.memory_space<vmem>>, vector<1x128xf32>
    tpu.vector_store %arg7[%c0_36, %c0_37], %31 {strides = array<i32>} : memref<8x384xf32, #tpu.memory_space<vmem>>, vector<1x128xf32>,
    %33 = vector.extract_strided_slice %25 {offsets = [1, 0], sizes = [1, 128], strides = [1, 1]} : vector<2x128xf32> to vector<1x128xf32>
    %c7_38 = arith.constant 7 : index
    %c256_39 = arith.constant 256 : index
    %34 = vector.load %arg7[%c7_38, %c256_39] : memref<8x384xf32, #tpu.memory_space<vmem>>, vector<1x128xf32>
    tpu.vector_store %arg7[%c7_38, %c256_39], %33 {strides = array<i32>} : memref<8x384xf32, #tpu.memory_space<vmem>>, vector<1x128xf32>,
    %c0_40 = arith.constant 0 : index
    %c0_41 = arith.constant 0 : index
    %35 = vector.load %arg7[%c0_40, %c0_41] : memref<8x384xf32, #tpu.memory_space<vmem>>, vector<8x384xf32>
    %cst_42 = arith.constant dense<0.000000e+00> : vector<8x128xf32>
    %36 = tpu.matmul %35, %0, %cst_42 {dimension_numbers = #tpu.dot_dimension_numbers<[1], [0], [0], [1], [0, 0, 1, 1], [], []>} : vector<8x384xf32>, vector<384x128xf32>, vector<8x128xf32> -> vector<8x128xf32>
    %37 = vector.broadcast %1 : vector<1x128xf32> to vector<8x128xf32>
    %38 = arith.addf %36, %37 : vector<8x128xf32>
    %c1_43 = arith.constant 1 : index
    %c0_44 = arith.constant 0 : index
    %c0_45 = arith.constant 0 : index
    %39 = vector.load %arg6[%c1_43, %c0_44, %c0_45] : memref<2x8x128xf32, #tpu.memory_space<vmem>>, vector<1x8x128xf32>
    %40 = vector.shape_cast %39 : vector<1x8x128xf32> to vector<8x128xf32>
    %41 = vector.shape_cast %38 : vector<8x128xf32> to vector<1x8x128xf32>
    tpu.vector_store %arg6[%c1_43, %c0_44, %c0_45], %41 {strides = array<i32>} : memref<2x8x128xf32, #tpu.memory_space<vmem>>, vector<1x8x128xf32>,
    return
  }
  func.func @transform_0(%arg0: i32, %arg1: i32) -> (i32, i32, i32) {
    %c0_i32 = arith.constant 0 : i32
    %c0_i32_0 = arith.constant 0 : i32
    return %arg0, %arg1, %c0_i32 : i32, i32, i32
  }
  func.func @transform_1(%arg0: i32, %arg1: i32) -> (i32, i32, i32, i32) {
    %c0_i32 = arith.constant 0 : i32
    %c0_i32_0 = arith.constant 0 : i32
    %c0_i32_1 = arith.constant 0 : i32
    return %arg0, %arg1, %c0_i32, %c0_i32_0 : i32, i32, i32, i32
  }
  func.func @transform_2(%arg0: i32, %arg1: i32) -> (i32, i32) {
    %c0_i32 = arith.constant 0 : i32
    %c0_i32_0 = arith.constant 0 : i32
    %c0_i32_1 = arith.constant 0 : i32
    return %c0_i32, %c0_i32_0 : i32, i32
  }
  func.func @transform_3(%arg0: i32, %arg1: i32) -> (i32, i32) {
    %c0_i32 = arith.constant 0 : i32
    %c0_i32_0 = arith.constant 0 : i32
    %c0_i32_1 = arith.constant 0 : i32
    return %c0_i32, %c0_i32_0 : i32, i32
  }
  func.func @transform_4(%arg0: i32, %arg1: i32) -> (i32, i32, i32) {
    %c0_i32 = arith.constant 0 : i32
    %c0_i32_0 = arith.constant 0 : i32
    return %arg0, %arg1, %c0_i32 : i32, i32, i32
  }
}

</mosaic_0001>

<bundles_post_ra>
// kernel: tpu_custom_call.1
= control target key start
LH: loop header
LB: loop body
LE: loop exit
PB: predicated region body
PF: predicated region fallthrough
CT: control target
= control target key end

     0   :  { %s1262_s0 = inlined_call_operand.hbm [shape: f32[2,32,128], index: 0, kind: input, shape index: {}]   ;;  %s1263_s1 = inlined_call_operand.hbm [shape: f32[2,4,2,128], index: 1, kind: input, shape index: {}]   ;;  %s1264_s2 = inlined_call_operand.hbm [shape: f32[384,128], index: 2, kind: input, shape index: {}]   ;;  %s1265_s3 = inlined_call_operand.vmem [shape: f32[1,128], index: 3, kind: input, shape index: {}]   ;;  %s1266_s4 = inlined_call_operand.hbm [shape: f32[2,32,128], index: 4, kind: output, shape index: {}]  }
   0x1   :  { %1274 = sst [smem:[#allocation19_spill]] %s1262_s0 }
   0x2   :  { %1275 = sst [smem:[#allocation20_spill]] %s1264_s2 }
   0x3   :  { %9 = vsyncpa [#allocation4], 0 }
   0x4   :  { %11 = vsyncpa [#allocation4 + $0x1], 0 }
   0x5   :  { %12 = vsyncpa [#allocation7], 0 }
   0x6   :  { %14 = vsyncpa [#allocation7 + $0x1], 0 }
   0x7   :  { %15 = vsyncpa [#allocation5], 0 }
   0x8   :  { %17 = vsyncpa [#allocation5 + $0x1], 0  ;;  %s969_s15 = smov 0   ;;  %s971_s16 = smov 0  }
   0x9   :  { %s973_s17 = smov 0   ;;  %s975_s18 = smov 0  }
   0xa   :  { %s977_s19 = smov 0   ;;  %s979_s20 = smov 0  }
   0xb LB: > { %1276 = sst [smem:[#allocation14_spill]] %s913_s15  ;;  %s1000_s21 = sadd.s32 4294967295, %s933_s20   ;;  %s933_s20 = sphi %s979_s20, %s23_s20   ;;  %s929_s19 = sphi %s977_s19, %s1299_s19   ;;  %s925_s18 = sphi %s975_s18, %s1298_s18   ;;  %s921_s17 = sphi %s973_s17, %s1294_s17   ;;  %s917_s16 = sphi %s971_s16, %s1297_s16   ;;  %s913_s15 = sphi %s969_s15, %s1296_s15  }
   0xc   : > { %1277 = sst [smem:[#allocation15_spill]] %s921_s17  ;;  %s646_s22 = sadd.s32 4294967294, %s933_s20  }
   0xd   : > { %p57_p0 = scmp.ne.s32.totalorder %s917_s16, %s913_s15  ;;  %p58_p1 = scmp.eq.s32.totalorder %s1000_s21, 0 }
   0xe   : > { %p153_p2 = scmp.eq.s32.totalorder %s1000_s21, 3  ;;  %p159_p3 = scmp.eq.s32.totalorder %s646_s22, 3 }
   0xf   : > { %p1009_p4 = por %p58_p1, %p57_p0  ;;  %p647_p5 = scmp.ge.s32.totalorder %s933_s20, 1 }
  0x10   : > { %p1014_p6 = por %p159_p3, %p57_p0  ;;  %p166_p7 = scmp.lt.s32.totalorder %s933_s20, 5 }
  0x11   : > { %s1281_s2 = sld [smem:[#allocation20_spill]]  ;;  %s935_s29 = smov [#allocation8]  }
  0x12   : > { %s1279_s24 = scalar_select %p1014_p6, 1, 0 }
  0x13   : > { %p1022_p8 = pnand %p647_p5, %p166_p7  ;;  %s179_s30 = sshll.u32 %s935_s29, 4  ;;  %s180_s30 = int_to_ptr.vmem [resolvable:$true] %s179_s30 }
  0x14   : > { %1280 = sst [smem:[#allocation16_spill]] %s1279_s24  ;;  %s1267_s5 = smov 128  }
  0x15   : > { %p676_p9 = pneg %p1022_p8  ;;  %s1269_s6 = smov 8  }
  0x16   : > { %s32_s7 = sadd.s32 1, %s929_s19  ;;  %s44_s8 = sadd.s32 1, %s921_s17 }
  0x17   : > { %s177_s27 = sshll.u32 %s1281_s2, 4  ;;  %p677_p10 = pnand %p676_p9, %p58_p1  ;;  %s178_s27 = int_to_ptr.hbm [resolvable:$true] %s177_s27 }
  0x18   : > { %p33_p11 = scmp.ge.s32.totalorder %s32_s7, 4  ;;  %p51_p12 = scmp.ne.s32.totalorder %s921_s17, %s917_s16 }
  0x19   : > { %679 = dma.hbm_to_vmem [thread:$0]  (!%p677_p10), %s178_s27, 6144, %s180_s30, [#allocation7], %s1267_s5, %s1267_s5, %s1269_s6  }
  0x1a   : > { %p52_p13 = scmp.eq.s32.totalorder %s933_s20, 0  ;;  %s1301_s7 = smov (%p33_p11, %s32_s7), 0 }
  0x1b   : > { %1283 = sst [smem:[#allocation17_spill]] %s1301_s7  ;;  %p1046_p3 = por %p153_p2, %p51_p12 }
  0x1c   : > { %p1040_p0 = por %p52_p13, %p51_p12  ;;  %s40_s11 = ssub.s32 %s929_s19, %s1301_s7 }
  0x1d   : > { %p692_p5 = scmp.lt.s32.totalorder %s933_s20, 4  ;;  %p42_p7 = scmp.eq.s32.totalorder %s40_s11, 0 }
  0x1e   : > { %s196_s12 = sand.u32 1, %s921_s17   ;;  %s651_s22 = sshll.u32 %s929_s19, 3 }
  0x1f   : > { %s650_s13 = sshll.u32 %s196_s12, 4  ;;  %s1287_s0 = sld [smem:[#allocation19_spill]] }
  0x20   : > { %s1055_s14 = scalar_select %p42_p7, %s921_s17, %s44_s8  }
  0x21   : > { %s200_s29 = scalar_lea.vmem [#allocation3], %s650_s13  ;;  %p1063_p2 = pnand %p692_p5, %p1040_p0 }
  0x22   : > { %1286 = sst [smem:[#allocation18_spill]] %s1055_s14  ;;  %s210_s30 = sshll.u32 %s200_s29, 4  ;;  %s211_s30 = int_to_ptr.vmem [resolvable:$true] %s210_s30 }
  0x23   : > { %s220_s11 = sand.u32 1, %s933_s20   ;;  %s197_s8 = scalar_lea.sflag [#allocation4], %s196_s12 }
  0x24   : > { %s938_s2 = smov 512   ;;  %s1289_s7 = smov 8  }
  0x25   : > { %s207_s27 = scalar_lea.hbm %s1287_s0, %s651_s22  ;;  %s1290_s14 = smov 128  }
  0x26   : > { %s208_s5 = sshll.u32 %s207_s27, 4  ;;  %s652_s22 = sshll.u32 %s196_s12, 2  ;;  %s209_s5 = int_to_ptr.hbm [resolvable:$true] %s208_s5 }
  0x27   : > { %683 = dma.hbm_to_vmem [thread:$0]  (!%p1063_p2), %s209_s5, 256, %s211_s30, %s197_s8, %s938_s2, %s1290_s14, %s1289_s7  }
  0x28   : > { %s653_s13 = sshll.u32 %s929_s19, 1  ;;  %s224_s29 = scalar_lea.vmem [#allocation6], %s652_s22 }
  0x29   : > { %s231_s27 = scalar_lea.hbm %s1263_s1, %s653_s13  ;;  %s234_s0 = sshll.u32 %s224_s29, 4  ;;  %s235_s0 = int_to_ptr.vmem [resolvable:$true] %s234_s0 }
  0x2a   : > { %s232_s9 = sshll.u32 %s231_s27, 4  ;;  %s221_s17 = scalar_lea.sflag [#allocation7], %s220_s11  ;;  %s233_s9 = int_to_ptr.hbm [resolvable:$true] %s232_s9 }
  0x2b   : > { %s939_s24 = smov 32   ;;  %s940_s15 = smov 2  }
  0x2c   : > { %686 = dma.hbm_to_vmem [thread:$0]  (!%p1063_p2), %s233_s9, 64, %s235_s0, %s221_s17, %s1290_s14, %s939_s24, %s940_s15  }
  0x2d   : > { %246 = sbr.rel (%p1022_p8) target bundleno = 255 (0xff), region = 36  ;;  %s1082_s2 = sand.u32 (!%p1022_p8), 1, %s917_s16  }
  0x2e   : > { %s655_s5 = sshll.u32 (!%p1022_p8), %s1082_s2, 4  ;;  %s249_s7 = scalar_lea.sflag (!%p1022_p8), [#allocation4], %s1082_s2 }
  0x2f   : > { %s1088_s12 = scalar_lea.vmem (!%p1022_p8), [#allocation3], %s655_s5 }
  0x32   : > { %896 = dma.done.wait (%p1009_p4), %s249_s7, 256  }
  0x33   : > { %898 = vsyncadd (%p1009_p4), %s249_s7, 4294967040  ;;  %s258_s0 = sand.u32 1, %s1000_s21   ;;  %s656_s15 = sshll.u32 %s1082_s2, 2 }
  0x34   : > { %s259_s17 = scalar_lea.sflag [#allocation7], %s258_s0  ;;  %s1096_s24 = scalar_lea.vmem [#allocation6], %s656_s15 }
  0x35   : > { %900 = dma.done.wait (%p1009_p4), %s259_s17, 64  }
  0x36   : > { %902 = vsyncadd (%p1009_p4), %s259_s17, 4294967232 }
  0x37   : > { %904 = dma.done.wait (%p58_p1), [#allocation7], 6144  }
  0x38   : > { %906 = vsyncadd (%p58_p1), [#allocation7], 4294961152  ;;  %v316_v0 = vld [vmem:[#allocation8 + $0x78] sm:$0xff]  ;;  %v315_v1 = vld [vmem:[#allocation8 + $0x70] sm:$0xff]  ;;  %s297_s28 = scalar_lea.vmem [#allocation9], %s655_s5  ;;  %s663_s6 = sshll.u32 %s925_s18, 3 }
  0x39   : > { %v1106_v2 = vld [vmem:[#allocation8 + $0xf8] sm:$0xff]  ;;  %368 = vmatpush.msra.mxu0 %v316_v0  ;;  %v1109_v3 = vld [vmem:[#allocation8 + $0xf0] sm:$0xff]  ;;  %v314_v4 = vld [vmem:[#allocation8 + $0x68] sm:$0xff]  ;;  %446 = vmatpush.msra.mxu3 %v316_v0  ;;  %s522_s11 = scalar_lea.hbm %s1266_s4, %s663_s6  ;;  %s523_s8 = sshll.u32 %s297_s28, 4  ;;  %s524_s8 = int_to_ptr.vmem [resolvable:$true] %s523_s8 }
  0x3a   : > { %388 = vmatpush.msra.mxu1 %v1106_v2  ;;  %v1111_v5 = vld [vmem:[#allocation8 + $0xe8] sm:$0xff]  ;;  %v313_v6 = vld [vmem:[#allocation8 + $0x60] sm:$0xff]  ;;  %v312_v8 = vld [vmem:[#allocation8 + $0x58] sm:$0xff]  ;;  %s525_s22 = sshll.u32 %s522_s11, 4  ;;  %s509_s13 = scalar_lea.sflag [#allocation5], %s1082_s2  ;;  %s526_s22 = int_to_ptr.hbm [resolvable:$true] %s525_s22 }
  0x3b   : > { %369 = vmatpush.msra.mxu0 %v315_v1  ;;  %v1114_v7 = vld [vmem:[#allocation8 + $0xe0] sm:$0xff]  ;;  %447 = vmatpush.msra.mxu3 %v315_v1  ;;  %v1117_v9 = vld [vmem:[#allocation8 + $0xd8] sm:$0xff]  ;;  %v311_v11 = vld [vmem:[#allocation8 + $0x50] sm:$0xff]  ;;  %s857_s25 = sshra.s32 %s526_s22, 4  ;;  %s863_s9 = scalar_lea.hbm %s1266_s4, 64  ;;  %s858_s25 = int_to_ptr.hbm [resolvable:$true] %s857_s25 }
  0x3c   : > { %389 = vmatpush.msra.mxu1 %v1109_v3  ;;  %v1120_v10 = vld [vmem:[#allocation8 + $0x178] sm:$0xff]  ;;  %v1122_v12 = vld [vmem:[#allocation8 + $0xd0] sm:$0xff]  ;;  %v1128_v14 = vld [vmem:[#allocation8 + $0x168] sm:$0xff]  ;;  %s859_s18 = scalar_lea.hbm %s858_s25, 16  ;;  %p864_p9 = scmp.lt.s32.totalorder %s858_s25, %s1266_s4 }
  0x3d   : > { %370 = vmatpush.msra.mxu0 %v314_v4  ;;  %448 = vmatpush.msra.mxu3 %v314_v4  ;;  %v1125_v13 = vld [vmem:[#allocation8 + $0x170] sm:$0xff]  ;;  %v310_v15 = vld [vmem:[#allocation8 + $0x48] sm:$0xff]  ;;  %v1134_v17 = vld [vmem:[#allocation8 + $0x160] sm:$0xff]  ;;  %p860_p1 = scmp.ne.s32.totalorder %s858_s25, %s859_s18  ;;  %p865_p10 = scmp.lt.s32.totalorder %s863_s9, %s859_s18 }
  0x3e   : > { %390 = vmatpush.msra.mxu1 %v1111_v5  ;;  %408 = vmatpush.msra.mxu2 %v1120_v10  ;;  %v1130_v16 = vld [vmem:[#allocation8 + $0xc8] sm:$0xff]  ;;  %v309_v18 = vld [vmem:[#allocation8 + $0x40] sm:$0xff]  ;;  %v1140_v20 = vld [vmem:[#allocation8 + $0x158] sm:$0xff] }
  0x3f   : > { %371 = vmatpush.msra.mxu0 %v313_v6  ;;  %449 = vmatpush.msra.mxu3 %v313_v6  ;;  %v1136_v19 = vld [vmem:[#allocation8 + $0xc0] sm:$0xff]  ;;  %v308_v21 = vld [vmem:[#allocation8 + $0x38] sm:$0xff]  ;;  %v1146_v23 = vld [vmem:[#allocation8 + $0x150] sm:$0xff]  ;;  %p861_p4 = pnand %p860_p1, %p1046_p3  ;;  %p866_p11 = por %p865_p10, %p864_p9 }
  0x40   : > { %391 = vmatpush.msra.mxu1 %v1114_v7  ;;  %409 = vmatpush.msra.mxu2 %v1125_v13  ;;  %v1142_v22 = vld [vmem:[#allocation8 + $0xb8] sm:$0xff]  ;;  %v307_v26 = vld [vmem:[#allocation8 + $0x30] sm:$0xff]  ;;  %v1160_v31 = vld [vmem:[#allocation8 + $0x148] sm:$0xff] }
  0x41   : > { %372 = vmatpush.msra.mxu0 %v312_v8  ;;  %450 = vmatpush.msra.mxu3 %v312_v8  ;;  %v1149_v24 = vld [vmem:[%s1088_s12] sm:$0xff]  ;;  %v1152_v27 = vld [vmem:[#allocation8 + $0xb0] sm:$0xff]  ;;  %v1167_v35 = vld [vmem:[#allocation8 + $0x140] sm:$0xff]  ;;  %p862_p8 = pneg %p861_p4 }
  0x42   : > { %392 = vmatpush.msra.mxu1 %v1117_v9  ;;  %410 = vmatpush.msra.mxu2 %v1128_v14  ;;  %v351_v25 = vld [vmem:[%s1096_s24] sm:$0x3]  ;;  %v355_v28 = vrot.slane %v1149_v24, 1  ;;  %v1157_v30 = vld [vmem:[%s1088_s12 + $0x8] sm:$0xff]  ;;  %v353_v32 = vrot.slane %v1149_v24, 7  ;;  %v306_v33 = vld [vmem:[#allocation8 + $0x28] sm:$0xff] }
  0x43   : > { %373 = vmatpush.msra.mxu0 %v311_v11  ;;  %451 = vmatpush.msra.mxu3 %v311_v11  ;;  %v359_v29 = vrot.slane %v351_v25, 1  ;;  %v1163_v34 = vld [vmem:[#allocation8 + $0xa8] sm:$0xff]  ;;  %v305_v36 = vld [vmem:[#allocation8 + $0x20] sm:$0xff]  ;;  %v1173_v38 = vld [vmem:[#allocation8 + $0x138] sm:$0xff]  ;;  %v436_v43 = vrot.slane %v1157_v30, 1  ;;  %v434_v48 = vrot.slane %v1157_v30, 7  ;;  %p867_p12 = pnand %p866_p11, %p862_p8 }
  0x44   : > { %393 = vmatpush.msra.mxu1 %v1122_v12  ;;  %411 = vmatpush.msra.mxu2 %v1134_v17  ;;  %356 = vst [vmem:[#allocation2 + $0x10] sm:$0xff] %v355_v28  ;;  %v1169_v37 = vld [vmem:[#allocation8 + $0xa0] sm:$0xff]  ;;  %v304_v39 = vld [vmem:[#allocation8 + $0x18] sm:$0xff]  ;;  %v1179_v41 = vld [vmem:[#allocation8 + $0x130] sm:$0xff] }
  0x45   : > { %374 = vmatpush.msra.mxu0 %v310_v15  ;;  %452 = vmatpush.msra.mxu3 %v310_v15  ;;  %361 = vst [vmem:[#allocation2 + $0x17] sm:$0x1] %v359_v29  ;;  %v1175_v40 = vld [vmem:[#allocation8 + $0x98] sm:$0xff]  ;;  %v303_v44 = vld [vmem:[#allocation8 + $0x10] sm:$0xff]  ;;  %v338_v47 = vld [vmem:[#allocation8 + $0x128] sm:$0xff] }
  0x46   : > { %394 = vmatpush.msra.mxu1 %v1130_v16  ;;  %412 = vmatpush.msra.mxu2 %v1140_v20  ;;  %354 = vst [vmem:[#allocation2] sm:$0xff] %v353_v32  ;;  %v660_v42 = vld [vmem:[%s1096_s24 + $0x2] sm:$0x3]  ;;  %v1183_v45 = vld [vmem:[#allocation8 + $0x90] sm:$0xff]  ;;  %v302_v49 = vld [vmem:[#allocation8 + $0x8] sm:$0xff] }
  0x47   : > { %375 = vmatpush.msra.mxu0 %v309_v18  ;;  %453 = vmatpush.msra.mxu3 %v309_v18  ;;  %357 = vst [vmem:[#allocation2] sm:$0x1] %v351_v25  ;;  %v440_v46 = vrot.slane %v660_v42, 1  ;;  %v1188_v50 = vld [vmem:[#allocation8 + $0x88] sm:$0xff]  ;;  %v337_v52 = vld [vmem:[#allocation8 + $0x120] sm:$0xff]  ;;  %v336_v56 = vld [vmem:[#allocation8 + $0x118] sm:$0xff] }
  0x48   : > { %395 = vmatpush.msra.mxu1 %v1136_v19  ;;  %413 = vmatpush.msra.mxu2 %v1146_v23  ;;  %v301_v53 = vld [vmem:[#allocation8] sm:$0xff]  ;;  %v335_v57 = vld [vmem:[#allocation8 + $0x110] sm:$0xff]  ;;  %v334_v58 = vld [vmem:[#allocation8 + $0x108] sm:$0xff] }
  0x49   : > { %376 = vmatpush.msra.mxu0 %v308_v21  ;;  %454 = vmatpush.msra.mxu3 %v308_v21  ;;  %v317_v54 = vld [vmem:[#allocation8 + $0x80] sm:$0xff] }
  0x4a   : > { %396 = vmatpush.msra.mxu1 %v1142_v22  ;;  %414 = vmatpush.msra.mxu2 %v1160_v31  ;;  %v333_v59 = vld [vmem:[#allocation8 + $0x100] sm:$0xff] }
  0x4b   : > { %377 = vmatpush.msra.mxu0 %v307_v26  ;;  %455 = vmatpush.msra.mxu3 %v307_v26  ;;  %v752_v62 = vld [vmem:[%s1265_s3] ss:$0 sm:$0xff] }
  0x4c   : > { %397 = vmatpush.msra.mxu1 %v1152_v27  ;;  %415 = vmatpush.msra.mxu2 %v1167_v35  ;;  %v364_v51 = vld [vmem:[#allocation2 + $0x10] sm:$0xff] }
  0x4d   : > { %378 = vmatpush.msra.mxu0 %v306_v33  ;;  %456 = vmatpush.msra.mxu3 %v306_v33  ;;  %437 = vst [vmem:[#allocation2 + $0x10] sm:$0xff] %v436_v43 }
  0x4e   : > { %398 = vmatpush.msra.mxu1 %v1163_v34  ;;  %416 = vmatpush.msra.mxu2 %v1173_v38  ;;  %442 = vst [vmem:[#allocation2 + $0x17] sm:$0x1] %v440_v46  ;;  %v362_v55 = vld [vmem:[#allocation2] sm:$0xff] }
  0x4f   : > { %379 = vmatpush.msra.mxu0 %v305_v36  ;;  %457 = vmatpush.msra.mxu3 %v305_v36  ;;  %435 = vst [vmem:[#allocation2] sm:$0xff] %v434_v48 }
  0x50   : > { %399 = vmatpush.msra.mxu1 %v1169_v37  ;;  %417 = vmatpush.msra.mxu2 %v1179_v41  ;;  %438 = vst [vmem:[#allocation2] sm:$0x1] %v660_v42 }
  0x51   : > { %380 = vmatpush.msra.mxu0 %v304_v39  ;;  %458 = vmatpush.msra.mxu3 %v304_v39 }
  0x52   : > { %400 = vmatpush.msra.mxu1 %v1175_v40  ;;  %418 = vmatpush.msra.mxu2 %v338_v47 }
  0x53   : > { %381 = vmatpush.msra.mxu0 %v303_v44  ;;  %459 = vmatpush.msra.mxu3 %v303_v44 }
  0x54   : > { %401 = vmatpush.msra.mxu1 %v1183_v45  ;;  %419 = vmatpush.msra.mxu2 %v337_v52 }
  0x55   : > { %382 = vmatpush.msra.mxu0 %v302_v49  ;;  %460 = vmatpush.msra.mxu3 %v302_v49  ;;  %v445_v61 = vld [vmem:[#allocation2 + $0x10] sm:$0xff] }
  0x56   : > { %402 = vmatpush.msra.mxu1 %v1188_v50  ;;  %420 = vmatpush.msra.mxu2 %v336_v56 }
  0x57   : > { %383 = vmatpush.msra.mxu0 %v301_v53  ;;  %461 = vmatpush.msra.mxu3 %v301_v53  ;;  %v443_v60 = vld [vmem:[#allocation2] sm:$0xff] }
  0x58   : > { %403 = vmatpush.msra.mxu1 %v317_v54  ;;  %421 = vmatpush.msra.mxu2 %v335_v57 }
  0x59   : > { %466 = vmatpush.msrb.mxu0 %v1106_v2  ;;  %404 = vmatmul.f32.vlgmr.msra.gmra.mxu1 %v1149_v24 }
  0x5a   : > { %486 = vmatpush.msrb.mxu1 %v1120_v10  ;;  %384 = vmatmul.f32.vlgmr.msra.gmra.mxu0 %v362_v55 }
  0x5b   : > { %467 = vmatpush.msrb.mxu0 %v1109_v3  ;;  %422 = vmatpush.msra.mxu2 %v334_v58 }
  0x5c   : > { %487 = vmatpush.msrb.mxu1 %v1125_v13  ;;  %462 = vmatmul.f32.vlgmr.msra.gmra.mxu3 %v443_v60 }
  0x5d   : > { %468 = vmatpush.msrb.mxu0 %v1111_v5  ;;  %423 = vmatpush.msra.mxu2 %v333_v59 }
  0x5e   : > { %488 = vmatpush.msrb.mxu1 %v1128_v14  ;;  %424 = vmatmul.f32.vlgmr.msra.gmra.mxu2 %v364_v51 }
  0x5f   : > { %469 = vmatpush.msrb.mxu0 %v1114_v7 }
  0x60   : > { %489 = vmatpush.msrb.mxu1 %v1134_v17 }
  0x61   : > { %470 = vmatpush.msrb.mxu0 %v1117_v9 }
  0x62   : > { %490 = vmatpush.msrb.mxu1 %v1140_v20 }
  0x63   : > { %471 = vmatpush.msrb.mxu0 %v1122_v12 }
  0x64   : > { %491 = vmatpush.msrb.mxu1 %v1146_v23 }
  0x65   : > { %472 = vmatpush.msrb.mxu0 %v1130_v16 }
  0x66   : > { %492 = vmatpush.msrb.mxu1 %v1160_v31 }
  0x67   : > { %473 = vmatpush.msrb.mxu0 %v1136_v19 }
  0x68   : > { %493 = vmatpush.msrb.mxu1 %v1167_v35 }
  0x69   : > { %474 = vmatpush.msrb.mxu0 %v1142_v22 }
  0x6a   : > { %494 = vmatpush.msrb.mxu1 %v1173_v38 }
  0x6b   : > { %475 = vmatpush.msrb.mxu0 %v1152_v27 }
  0x6c   : > { %495 = vmatpush.msrb.mxu1 %v1179_v41 }
  0x6d   : > { %476 = vmatpush.msrb.mxu0 %v1163_v34 }
  0x6e   : > { %496 = vmatpush.msrb.mxu1 %v338_v47 }
  0x6f   : > { %477 = vmatpush.msrb.mxu0 %v1169_v37 }
  0x70   : > { %497 = vmatpush.msrb.mxu1 %v337_v52 }
  0x71   : > { %478 = vmatpush.msrb.mxu0 %v1175_v40 }
  0x72   : > { %498 = vmatpush.msrb.mxu1 %v336_v56 }
  0x73   : > { %479 = vmatpush.msrb.mxu0 %v1183_v45 }
  0x74   : > { %499 = vmatpush.msrb.mxu1 %v335_v57 }
  0x75   : > { %480 = vmatpush.msrb.mxu0 %v1188_v50 }
  0x76   : > { %500 = vmatpush.msrb.mxu1 %v334_v58 }
  0x77   : > { %481 = vmatpush.msrb.mxu0 %v317_v54 }
  0x78   : > { %501 = vmatpush.msrb.mxu1 %v333_v59  ;;  %482 = vmatmul.f32.vlgmr.msrb.gmra.mxu0 %v1157_v30 }
  0x79   : > { %502 = vmatmul.f32.vlgmr.msrb.gmra.mxu1 %v445_v61 }
  0xd6   : > { %v405_v1 = vpop.f32.mrf.mxu1 }
  0xd7   : > { %v385_v63 = vpop.f32.mrf.mxu0 }
  0xd8   : > { %v386_v0 = vadd.f32 %v752_v62, %v385_v63 }
  0xda   : > { %v406_v2 = vadd.f32 %v405_v1, %v386_v0 }
  0xdf   : > { %v463_v5 = vpop.f32.mrf.mxu3 }
  0xe0   : > { %v464_v6 = vadd.f32 %v752_v62, %v463_v5 }
  0xe1   : > { %v425_v3 = vpop.f32.mrf.mxu2 }
  0xe2   : > { %v426_v4 = vadd.f32 %v425_v3, %v406_v2 }
  0xe4   : > { %428 = vst [vmem:[%s297_s28] sm:$0xff] %v426_v4 }
  0xf5   : > { %v483_v7 = vpop.f32.mrf.mxu0 }
  0xf6   : > { %v503_v8 = vpop.f32.mrf.mxu1  ;;  %v484_v9 = vadd.f32 %v483_v7, %v464_v6 }
  0xf8   : > { %v504_v10 = vadd.f32 %v503_v8, %v484_v9 }
  0xfa   : > { %661 = vst [vmem:[%s297_s28 + $0x8] sm:$0xff] %v504_v10 }
  0xfb   : > { %870 = shalt.err (!%p867_p12)
}
  0xfc   : > { %s941_s2 = smov 128   ;;  %s942_s7 = smov 512  }
  0xfd   : > { %s943_s12 = smov 8  }
  0xfe   : > { %674 = dma.vmem_to_hbm [thread:$0]  (%p1046_p3), %s524_s8, 256, %s526_s22, %s509_s13, %s941_s2, %s942_s7, %s943_s12  }
  0xff PF: > { %s1291_s0 = sld [smem:[#allocation14_spill]]  ;;  %p694_p13 = scmp.ge.s32.totalorder %s933_s20, 2 }
 0x101   : > { %p688_p0 = pnand %p694_p13, %p1014_p6 }
 0x103   : > { %p689_p5 = pneg %p688_p0 }
 0x105   : > { %s540_s17 = sand.u32 1, %s1291_s0  }
 0x106   : > { %s541_s24 = scalar_lea.sflag [#allocation5], %s540_s17 }
 0x107   : > { %908 = dma.done.wait (%p689_p5), %s541_s24, 256  }
 0x108   : > { %910 = vsyncadd (%p689_p5), %s541_s24, 4294967040  ;;  %s23_s20 = sadd.s32 1, %s933_s20   ;;  %s1293_s21 = sld [smem:[#allocation15_spill]] }
 0x109   : > { %p20_p7 = scmp.ge.s32.totalorder %s23_s20, 6   ;;  %s1294_s17 = sld [smem:[#allocation18_spill]] }
 0x10a   : > { %s1295_s10 = sld [smem:[#allocation17_spill]]  ;;  %s1296_s15 = smov %s917_s16 }
 0x10b   : > { %s1298_s18 = smov %s929_s19 }
 0x10c   :  { %22 = sbr.rel (!%p20_p7) target bundleno = 11 (0xb), region = 101 }
 0x10e   : > { %s1297_s16 = smov %s1293_s21 }
 0x110   : > { %s1299_s19 = smov %s1295_s10 }
 0x111   :  { %547 = vsyncpa [#allocation4], 1 }
 0x112   :  { %549 = vsyncpa [#allocation4 + $0x1], 1 }
 0x113   :  { %550 = vsyncpa [#allocation7], 1 }
 0x114   :  { %552 = vsyncpa [#allocation7 + $0x1], 1 }
 0x115   :  { %553 = vsyncpa [#allocation5], 1 }
 0x116   :  { %555 = vsyncpa [#allocation5 + $0x1], 1 }

</bundles_post_ra>
